<compile_context>
chip_gen: v6e
topology: v6e:2x2x1
jax: 0.10.0
libtpu: 0.0.40
codegen_flags: <defaults>
</compile_context>

<pallas_src>
import math

import jax
import jax.numpy as jnp
from jax.experimental import pallas as pl
from jax.experimental.pallas import tpu as pltpu


def _sft_kernel(cond_ref, x_ref, w0_ref, b0_ref,
                ws1_ref, bs1_ref, wh1_ref, bh1_ref, out_ref):
    """Fused SFT layer on one (channels, pixel-tile) block.

      cond_ref (in_nc,  T)     condition features
      x_ref    (out_nc, T)     features to be modulated
      w0_ref   (2*nf, in_nc)   packed [scale_conv0 ; shift_conv0] (shared cond)
      b0_ref   (2*nf, 1)
      ws1_ref  (out_nc, nf)    scale_conv1 weight
      bs1_ref  (out_nc, 1)
      wh1_ref  (out_nc, nf)    shift_conv1 weight
      bh1_ref  (out_nc, 1)
      out_ref  (out_nc, T)
    """
    cond = cond_ref[...]                       # (in_nc, T)
    x = x_ref[...]                             # (out_nc, T)
    nf = ws1_ref.shape[1]

    # conv0 for both branches in one MXU matmul + leaky_relu(0.1).
    h = jnp.dot(w0_ref[...], cond, preferred_element_type=jnp.float32)
    h = h + b0_ref[...]                        # (2*nf, T)
    h = jnp.where(h >= 0, h, 0.1 * h)

    # conv1 split into two dots — no block-diagonal zero MACs, no (2*out_nc,T) temp.
    scale = jnp.dot(ws1_ref[...], h[:nf, :], preferred_element_type=jnp.float32)
    scale = scale + bs1_ref[...]               # (out_nc, T)
    shift = jnp.dot(wh1_ref[...], h[nf:, :], preferred_element_type=jnp.float32)
    shift = shift + bh1_ref[...]               # (out_nc, T)

    out_ref[...] = (x * (scale + 1.0) + shift).astype(out_ref.dtype)


def init_raw_params(key, in_nc=32, out_nc=64, nf=32):
    """Synthetic Conv2d(kernel=1) parameters, PyTorch-style uniform init.

    Weights stored as (Cout, Cin); biases as (Cout, 1).
    Returns (w_s0, b_s0, w_s1, b_s1, w_h0, b_h0, w_h1, b_h1).
    """
    ks = jax.random.split(key, 8)

    def w(k, cout, cin):
        bound = 1.0 / math.sqrt(cin)
        return jax.random.uniform(k, (cout, cin), jnp.float32, -bound, bound)

    def b(k, cout, cin):
        bound = 1.0 / math.sqrt(cin)
        return jax.random.uniform(k, (cout, 1), jnp.float32, -bound, bound)

    w_s0, b_s0 = w(ks[0], nf, in_nc), b(ks[1], nf, in_nc)
    w_s1, b_s1 = w(ks[2], out_nc, nf), b(ks[3], out_nc, nf)
    w_h0, b_h0 = w(ks[4], nf, in_nc), b(ks[5], nf, in_nc)
    w_h1, b_h1 = w(ks[6], out_nc, nf), b(ks[7], out_nc, nf)
    return w_s0, b_s0, w_s1, b_s1, w_h0, b_h0, w_h1, b_h1


def pack_params(raw):
    """Pack conv0 of both branches (shared input) into one weight; keep conv1 split."""
    w_s0, b_s0, w_s1, b_s1, w_h0, b_h0, w_h1, b_h1 = raw
    w0 = jnp.concatenate([w_s0, w_h0], axis=0)            # (2*nf, in_nc)
    b0 = jnp.concatenate([b_s0, b_h0], axis=0)            # (2*nf, 1)
    return w0, b0, w_s1, b_s1, w_h1, b_h1


def sft_layer_p3(x, cond, packed_params, *, tile_hw=4096):
    """SFTLayer_p3 forward.  x: (B, out_nc, H, W), cond: (B, in_nc, H, W)."""
    B, out_nc, H, W = x.shape
    Bc, in_nc, Hc, Wc = cond.shape
    assert (B, H, W) == (Bc, Hc, Wc)
    w0, b0, w_s1, b_s1, w_h1, b_h1 = packed_params
    nf = w_s1.shape[1]
    HW = H * W

    # Pixel tile on the lane axis: multiple of 128, capped at tile_hw / padded HW.
    t = min(tile_hw, ((HW + 127) // 128) * 128)
    t = max(128, (t // 128) * 128)
    # Small-H*W: keep several grid steps so both v7x TCs get pipelined work.
    while B * ((HW + t - 1) // t) < 8 and t > 128:
        t = max(128, ((t // 2) // 128) * 128)

    # Free reshapes — no NCHW<->NHWC transposes, no padding passes over HBM.
    x2 = x.reshape(B, out_nc, HW)
    c2 = cond.reshape(B, in_nc, HW)

    grid = (B, pl.cdiv(HW, t))

    # Per-step VMEM estimate (double-buffered I/O + matmul temps); raise the
    # scoped-VMEM limit only if a large tile needs it (default tile -> 32 MiB).
    io_bytes = 2 * (in_nc + 2 * out_nc) * t * 4
    tmp_bytes = (2 * nf + 2 * out_nc) * t * 4
    vmem_limit = min(48 * 1024 * 1024,
                     max(32 * 1024 * 1024, 2 * (io_bytes + tmp_bytes)))

    def const_spec(arr):
        return pl.BlockSpec(arr.shape, lambda b, j: (0, 0))

    out = pl.pallas_call(
        _sft_kernel,
        out_shape=jax.ShapeDtypeStruct((B, out_nc, HW), jnp.float32),
        grid_spec=pltpu.PrefetchScalarGridSpec(
            num_scalar_prefetch=0,
            grid=grid,
            in_specs=[
                pl.BlockSpec((None, in_nc, t), lambda b, j: (b, 0, j)),   # cond
                pl.BlockSpec((None, out_nc, t), lambda b, j: (b, 0, j)),  # x
                const_spec(w0), const_spec(b0),
                const_spec(w_s1), const_spec(b_s1),
                const_spec(w_h1), const_spec(b_h1),
            ],
            out_specs=pl.BlockSpec((None, out_nc, t), lambda b, j: (b, 0, j)),
        ),
        compiler_params=pltpu.CompilerParams(
            dimension_semantics=("parallel", "parallel"),
            vmem_limit_bytes=vmem_limit),
    )(c2, x2, w0, b0, w_s1, b_s1, w_h1, b_h1)

    return out.reshape(B, out_nc, H, W)


def _reference(x, cond, raw):
    """Pure-JAX reference (unpacked weights) for correctness checking."""
    w_s0, b_s0, w_s1, b_s1, w_h0, b_h0, w_h1, b_h1 = raw

    def conv1x1(t, w, b):
        y = jnp.einsum("oi,bihw->bohw", w, t)
        return y + b.reshape(1, -1, 1, 1)

    def lrelu(t):
        return jnp.where(t >= 0, t, 0.1 * t)

    scale = conv1x1(lrelu(conv1x1(cond, w_s0, b_s0)), w_s1, b_s1)
    shift = conv1x1(lrelu(conv1x1(cond, w_h0, b_h0)), w_h1, b_h1)
    return x * (scale + 1.0) + shift


if __name__ == "__main__":
    # Module defaults: in_nc=32, out_nc=64, nf=32 (1x1 convs); small spatial size.
    B, in_nc, out_nc, nf, H, W = 2, 32, 64, 32, 16, 16

    key = jax.random.PRNGKey(0)
    kx, kc, kp = jax.random.split(key, 3)
    x = jax.random.normal(kx, (B, out_nc, H, W), jnp.float32)
    cond = jax.random.normal(kc, (B, in_nc, H, W), jnp.float32)

    raw = init_raw_params(kp, in_nc=in_nc, out_nc=out_nc, nf=nf)
    packed = pack_params(raw)

    out = sft_layer_p3(x, cond, packed)
    jax.block_until_ready(out)

    assert out.shape == (B, out_nc, H, W) and out.dtype == jnp.float32
    assert bool(jnp.isfinite(out).all())

    ref = _reference(x, cond, raw)
    max_err = float(jnp.max(jnp.abs(out - ref)))
    assert max_err < 1e-4, f"mismatch vs reference: {max_err}"

    print("KERNEL_OK")
</pallas_src>

<mosaic_0001>
module attributes {stable_mosaic.version = 11 : i64} {
  func.func @_sft_kernel(%arg0: i32, %arg1: i32, %arg2: memref<1x32x128xf32, #tpu.memory_space<vmem>>, %arg3: memref<1x64x128xf32, #tpu.memory_space<vmem>>, %arg4: memref<64x32xf32, #tpu.memory_space<vmem>>, %arg5: memref<64x1xf32, #tpu.memory_space<vmem>>, %arg6: memref<64x32xf32, #tpu.memory_space<vmem>>, %arg7: memref<64x1xf32, #tpu.memory_space<vmem>>, %arg8: memref<64x32xf32, #tpu.memory_space<vmem>>, %arg9: memref<64x1xf32, #tpu.memory_space<vmem>>, %arg10: memref<1x64x128xf32, #tpu.memory_space<vmem>>) attributes {dimension_semantics = [#tpu.dimension_semantics<parallel>, #tpu.dimension_semantics<parallel>], iteration_bounds = array<i64: 2, 2>, scalar_prefetch = 0 : i64, scratch_operands = 0 : i64, tpu.core_type = #tpu.core_type<tc>, window_params = [{transform_indices = @transform_0, window_bounds = array<i64: 1, 32, 128>}, {transform_indices = @transform_1, window_bounds = array<i64: 1, 64, 128>}, {pipeline_mode = #tpu.pipeline_mode<synchronous>, transform_indices = @transform_2, window_bounds = array<i64: 64, 32>}, {pipeline_mode = #tpu.pipeline_mode<synchronous>, transform_indices = @transform_3, window_bounds = array<i64: 64, 1>}, {pipeline_mode = #tpu.pipeline_mode<synchronous>, transform_indices = @transform_4, window_bounds = array<i64: 64, 32>}, {pipeline_mode = #tpu.pipeline_mode<synchronous>, transform_indices = @transform_5, window_bounds = array<i64: 64, 1>}, {pipeline_mode = #tpu.pipeline_mode<synchronous>, transform_indices = @transform_6, window_bounds = array<i64: 64, 32>}, {pipeline_mode = #tpu.pipeline_mode<synchronous>, transform_indices = @transform_7, window_bounds = array<i64: 64, 1>}, {transform_indices = @transform_8, window_bounds = array<i64: 1, 64, 128>}]} {
    %c0 = arith.constant 0 : index
    %c0_0 = arith.constant 0 : index
    %c0_1 = arith.constant 0 : index
    %0 = vector.load %arg2[%c0, %c0_0, %c0_1] : memref<1x32x128xf32, #tpu.memory_space<vmem>>, vector<1x32x128xf32>
    %1 = vector.shape_cast %0 : vector<1x32x128xf32> to vector<32x128xf32>
    %c0_2 = arith.constant 0 : index
    %c0_3 = arith.constant 0 : index
    %c0_4 = arith.constant 0 : index
    %2 = vector.load %arg3[%c0_2, %c0_3, %c0_4] : memref<1x64x128xf32, #tpu.memory_space<vmem>>, vector<1x64x128xf32>
    %3 = vector.shape_cast %2 : vector<1x64x128xf32> to vector<64x128xf32>
    %c0_5 = arith.constant 0 : index
    %c0_6 = arith.constant 0 : index
    %4 = vector.load %arg4[%c0_5, %c0_6] : memref<64x32xf32, #tpu.memory_space<vmem>>, vector<64x32xf32>
    %cst = arith.constant dense<0.000000e+00> : vector<64x128xf32>
    %5 = tpu.matmul %4, %1, %cst {dimension_numbers = #tpu.dot_dimension_numbers<[1], [0], [0], [1], [0, 0, 1, 1], [], []>} : vector<64x32xf32>, vector<32x128xf32>, vector<64x128xf32> -> vector<64x128xf32>
    %c0_7 = arith.constant 0 : index
    %c0_8 = arith.constant 0 : index
    %6 = vector.load %arg5[%c0_7, %c0_8] : memref<64x1xf32, #tpu.memory_space<vmem>>, vector<64x1xf32>
    %7 = vector.broadcast %6 : vector<64x1xf32> to vector<64x128xf32>
    %8 = arith.addf %5, %7 : vector<64x128xf32>
    %cst_9 = arith.constant 0.000000e+00 : f32
    %9 = vector.broadcast %cst_9 : f32 to vector<64x128xf32>
    %10 = arith.cmpf oge, %8, %9 : vector<64x128xf32>
    %cst_10 = arith.constant 1.000000e-01 : f32
    %11 = vector.broadcast %cst_10 : f32 to vector<64x128xf32>
    %12 = arith.mulf %11, %8 : vector<64x128xf32>
    %13 = arith.select %10, %8, %12 : vector<64x128xi1>, vector<64x128xf32>
    %c0_11 = arith.constant 0 : index
    %c0_12 = arith.constant 0 : index
    %14 = vector.load %arg6[%c0_11, %c0_12] : memref<64x32xf32, #tpu.memory_space<vmem>>, vector<64x32xf32>
    %15 = vector.extract_strided_slice %13 {offsets = [0, 0], sizes = [32, 128], strides = [1, 1]} : vector<64x128xf32> to vector<32x128xf32>
    %cst_13 = arith.constant dense<0.000000e+00> : vector<64x128xf32>
    %16 = tpu.matmul %14, %15, %cst_13 {dimension_numbers = #tpu.dot_dimension_numbers<[1], [0], [0], [1], [0, 0, 1, 1], [], []>} : vector<64x32xf32>, vector<32x128xf32>, vector<64x128xf32> -> vector<64x128xf32>
    %c0_14 = arith.constant 0 : index
    %c0_15 = arith.constant 0 : index
    %17 = vector.load %arg7[%c0_14, %c0_15] : memref<64x1xf32, #tpu.memory_space<vmem>>, vector<64x1xf32>
    %18 = vector.broadcast %17 : vector<64x1xf32> to vector<64x128xf32>
    %19 = arith.addf %16, %18 : vector<64x128xf32>
    %c0_16 = arith.constant 0 : index
    %c0_17 = arith.constant 0 : index
    %20 = vector.load %arg8[%c0_16, %c0_17] : memref<64x32xf32, #tpu.memory_space<vmem>>, vector<64x32xf32>
    %21 = vector.extract_strided_slice %13 {offsets = [32, 0], sizes = [32, 128], strides = [1, 1]} : vector<64x128xf32> to vector<32x128xf32>
    %cst_18 = arith.constant dense<0.000000e+00> : vector<64x128xf32>
    %22 = tpu.matmul %20, %21, %cst_18 {dimension_numbers = #tpu.dot_dimension_numbers<[1], [0], [0], [1], [0, 0, 1, 1], [], []>} : vector<64x32xf32>, vector<32x128xf32>, vector<64x128xf32> -> vector<64x128xf32>
    %c0_19 = arith.constant 0 : index
    %c0_20 = arith.constant 0 : index
    %23 = vector.load %arg9[%c0_19, %c0_20] : memref<64x1xf32, #tpu.memory_space<vmem>>, vector<64x1xf32>
    %24 = vector.broadcast %23 : vector<64x1xf32> to vector<64x128xf32>
    %25 = arith.addf %22, %24 : vector<64x128xf32>
    %cst_21 = arith.constant 1.000000e+00 : f32
    %26 = vector.broadcast %cst_21 : f32 to vector<64x128xf32>
    %27 = arith.addf %19, %26 : vector<64x128xf32>
    %28 = arith.mulf %3, %27 : vector<64x128xf32>
    %29 = arith.addf %28, %25 : vector<64x128xf32>
    %c0_22 = arith.constant 0 : index
    %c0_23 = arith.constant 0 : index
    %c0_24 = arith.constant 0 : index
    %30 = vector.load %arg10[%c0_22, %c0_23, %c0_24] : memref<1x64x128xf32, #tpu.memory_space<vmem>>, vector<1x64x128xf32>
    %31 = vector.shape_cast %30 : vector<1x64x128xf32> to vector<64x128xf32>
    %32 = vector.shape_cast %29 : vector<64x128xf32> to vector<1x64x128xf32>
    tpu.vector_store %arg10[%c0_22, %c0_23, %c0_24], %32 {strides = array<i32>} : memref<1x64x128xf32, #tpu.memory_space<vmem>>, vector<1x64x128xf32>,
    return
  }
  func.func @transform_0(%arg0: i32, %arg1: i32) -> (i32, i32, i32) {
    %c0_i32 = arith.constant 0 : i32
    %c0_i32_0 = arith.constant 0 : i32
    return %arg0, %c0_i32, %arg1 : i32, i32, i32
  }
  func.func @transform_1(%arg0: i32, %arg1: i32) -> (i32, i32, i32) {
    %c0_i32 = arith.constant 0 : i32
    %c0_i32_0 = arith.constant 0 : i32
    return %arg0, %c0_i32, %arg1 : i32, i32, i32
  }
  func.func @transform_2(%arg0: i32, %arg1: i32) -> (i32, i32) {
    %c0_i32 = arith.constant 0 : i32
    %c0_i32_0 = arith.constant 0 : i32
    %c0_i32_1 = arith.constant 0 : i32
    return %c0_i32, %c0_i32_0 : i32, i32
  }
  func.func @transform_3(%arg0: i32, %arg1: i32) -> (i32, i32) {
    %c0_i32 = arith.constant 0 : i32
    %c0_i32_0 = arith.constant 0 : i32
    %c0_i32_1 = arith.constant 0 : i32
    return %c0_i32, %c0_i32_0 : i32, i32
  }
  func.func @transform_4(%arg0: i32, %arg1: i32) -> (i32, i32) {
    %c0_i32 = arith.constant 0 : i32
    %c0_i32_0 = arith.constant 0 : i32
    %c0_i32_1 = arith.constant 0 : i32
    return %c0_i32, %c0_i32_0 : i32, i32
  }
  func.func @transform_5(%arg0: i32, %arg1: i32) -> (i32, i32) {
    %c0_i32 = arith.constant 0 : i32
    %c0_i32_0 = arith.constant 0 : i32
    %c0_i32_1 = arith.constant 0 : i32
    return %c0_i32, %c0_i32_0 : i32, i32
  }
  func.func @transform_6(%arg0: i32, %arg1: i32) -> (i32, i32) {
    %c0_i32 = arith.constant 0 : i32
    %c0_i32_0 = arith.constant 0 : i32
    %c0_i32_1 = arith.constant 0 : i32
    return %c0_i32, %c0_i32_0 : i32, i32
  }
  func.func @transform_7(%arg0: i32, %arg1: i32) -> (i32, i32) {
    %c0_i32 = arith.constant 0 : i32
    %c0_i32_0 = arith.constant 0 : i32
    %c0_i32_1 = arith.constant 0 : i32
    return %c0_i32, %c0_i32_0 : i32, i32
  }
  func.func @transform_8(%arg0: i32, %arg1: i32) -> (i32, i32, i32) {
    %c0_i32 = arith.constant 0 : i32
    %c0_i32_0 = arith.constant 0 : i32
    return %arg0, %c0_i32, %arg1 : i32, i32, i32
  }
}

</mosaic_0001>

<bundles_post_ra>
// kernel: tpu_custom_call.1
= control target key start
LH: loop header
LB: loop body
LE: loop exit
PB: predicated region body
PF: predicated region fallthrough
CT: control target
= control target key end

     0   :  { %13 = vsyncpa [#allocation5], 0  ;;  %s1920_s0 = inlined_call_operand.vmem [shape: f32[2,32,256], index: 0, kind: input, shape index: {}]   ;;  %s1921_s1 = inlined_call_operand.vmem [shape: f32[2,64,256], index: 1, kind: input, shape index: {}]   ;;  %s1922_s2 = inlined_call_operand.vmem [shape: f32[64,32], index: 2, kind: input, shape index: {}]   ;;  %s1923_s3 = inlined_call_operand.vmem [shape: f32[64,1], index: 3, kind: input, shape index: {}]   ;;  %s1924_s4 = inlined_call_operand.vmem [shape: f32[64,32], index: 4, kind: input, shape index: {}]   ;;  %s1925_s5 = inlined_call_operand.vmem [shape: f32[64,1], index: 5, kind: input, shape index: {}]   ;;  %s1926_s6 = inlined_call_operand.vmem [shape: f32[64,32], index: 6, kind: input, shape index: {}]   ;;  %s1927_s7 = inlined_call_operand.vmem [shape: f32[64,1], index: 7, kind: input, shape index: {}]   ;;  %s1928_s8 = inlined_call_operand.hbm [shape: f32[2,64,256], index: 8, kind: output, shape index: {}]  }
   0x1   :  { %15 = vsyncpa [#allocation5 + $0x1], 0  ;;  %s1566_s27 = smov 0   ;;  %s1568_s28 = smov 0  }
   0x2   :  { %s1570_s29 = smov 0   ;;  %s1572_s30 = smov 0  }
   0x3   :  { %s1574_s9 = smov 0   ;;  %s1576_s10 = smov 0  }
   0x4   :  { %s1578_s11 = smov 0   ;;  %s1580_s12 = smov 0  }
   0x5 LB: > { %s1198_s13 = sadd.s32 4294967295, %s1514_s12   ;;  %s1199_s14 = sadd.s32 4294967294, %s1514_s12   ;;  %s1514_s12 = sphi %s1580_s12, %s21_s12   ;;  %s1510_s11 = sphi %s1578_s11, %s1944_s11   ;;  %s1506_s10 = sphi %s1576_s10, %s1943_s10   ;;  %s1502_s9 = sphi %s1574_s9, %s1942_s9   ;;  %s1498_s30 = sphi %s1572_s30, %s1941_s30   ;;  %s1494_s29 = sphi %s1570_s29, %s1940_s29   ;;  %s1490_s28 = sphi %s1568_s28, %s1939_s28   ;;  %s1486_s27 = sphi %s1566_s27, %s1938_s27  }
   0x6   : > { %s30_s15 = sadd.s32 1, %s1506_s10  ;;  %s33_s16 = sadd.s32 1, %s1510_s11 }
   0x7   : > { %p31_p0 = scmp.ge.s32.totalorder %s30_s15, 2  ;;  %p49_p1 = scmp.ne.s32.totalorder %s1494_s29, %s1490_s28 }
   0x8   : > { %p50_p2 = scmp.eq.s32.totalorder %s1514_s12, 0  ;;  %p235_p5 = scmp.eq.s32.totalorder %s1198_s13, 3 }
   0x9   : > { %s1946_s15 = smov (%p31_p0, %s30_s15), 0  ;;  %s1948_s16 = smov (!%p31_p0, %s33_s16), %s1510_s11 }
   0xa   : > { %1931 = sst [smem:[#allocation7_spill]] %s1946_s15  ;;  %s38_s17 = ssub.s32 %s1506_s10, %s1946_s15 }
   0xb   : > { %p1618_p3 = por %p50_p2, %p49_p1  ;;  %p35_p4 = scmp.ge.s32.totalorder %s1948_s16, 2 }
   0xc   : > { %p240_p6 = scmp.ne.s32.totalorder %s1490_s28, %s1486_s27  ;;  %p241_p7 = scmp.eq.s32.totalorder %s1199_s14, 3 }
   0xd   : > { %s1950_s16 = smov (%p35_p4, %s1948_s16), 0  ;;  %p1626_p8 = por %p235_p5, %p49_p1 }
   0xe   : > { %1933 = sst [smem:[#allocation8_spill]] %s1950_s16  ;;  %p1630_p9 = por %p241_p7, %p240_p6 }
   0xf   : > { %s37_s21 = ssub.s32 %s1510_s11, %s1950_s16  ;;  %s42_s23 = sadd.s32 1, %s1494_s29 }
  0x10   : > { %s39_s22 = sor.u32 %s38_s17, %s37_s21  ;;  %p1201_p11 = scmp.ge.s32.totalorder %s1514_s12, 4 }
  0x11   : > { %p40_p10 = scmp.eq.s32.totalorder %s39_s22, 0 }
  0x12   : > { %275 = sbr.rel (%p1201_p11) target bundleno = 41 (0x29), region = 40 }
  0x13   : > { %s1638_s24 = scalar_select %p40_p10, %s1494_s29, %s42_s23  }
  0x17   : > { %278 = sbr.rel (!%p1618_p3) target bundleno = 31 (0x1f), region = 44  ;;  %s280_s25 = sand.u32 (%p1618_p3), 1, %s1494_s29  }
  0x18   : > { %s1203_s26 = sshll.u32 (%p1618_p3), %s1510_s11, 3  ;;  %s1202_s13 = sshll.u32 (%p1618_p3), %s280_s25, 5 }
  0x19   : > { %s284_s14 = sadd.s32 (%p1618_p3), %s1506_s10, %s1203_s26  ;;  %s282_s22 = scalar_lea.vmem (%p1618_p3), [#allocation2], %s1202_s13 }
  0x1a   : > { %s1204_s15 = sshll.u32 (%p1618_p3), %s284_s14, 3 }
  0x1b   : > { %s286_s21 = scalar_lea.vmem (%p1618_p3), %s1920_s0, %s1204_s15 }
  0x1c   : > { %v321_v0 = vld [vmem:[%s286_s21] sm:$0xff]  ;;  %v323_v1 = vld [vmem:[%s286_s21 + $0x10] sm:$0xff] }
  0x1d   : > { %v325_v2 = vld [vmem:[%s286_s21 + $0x20] sm:$0xff]  ;;  %322 = vst [vmem:[%s282_s22] sm:$0xff] %v321_v0  ;;  %324 = vst [vmem:[%s282_s22 + $0x8] sm:$0xff] %v323_v1  ;;  %v327_v3 = vld [vmem:[%s286_s21 + $0x30] sm:$0xff] }
  0x1e   : > { %326 = vst [vmem:[%s282_s22 + $0x10] sm:$0xff] %v325_v2  ;;  %328 = vst [vmem:[%s282_s22 + $0x18] sm:$0xff] %v327_v3 }
  0x1f PF: > { %334 = sbr.rel (!%p1618_p3) target bundleno = 41 (0x29), region = 82  ;;  %s336_s23 = sand.u32 (%p1618_p3), 1, %s1494_s29  }
  0x20   : > { %s1206_s25 = sshll.u32 (%p1618_p3), %s1510_s11, 4  ;;  %s1205_s16 = sshll.u32 (%p1618_p3), %s336_s23, 6 }
  0x21   : > { %s340_s15 = sadd.s32 (%p1618_p3), %s1506_s10, %s1206_s25  ;;  %s338_s21 = scalar_lea.vmem (%p1618_p3), [#allocation3], %s1205_s16 }
  0x22   : > { %s1207_s26 = sshll.u32 (%p1618_p3), %s340_s15, 3 }
  0x23   : > { %s342_s13 = scalar_lea.vmem (%p1618_p3), %s1921_s1, %s1207_s26 }
  0x24   : > { %v385_v4 = vld [vmem:[%s342_s13] sm:$0xff]  ;;  %v387_v5 = vld [vmem:[%s342_s13 + $0x10] sm:$0xff] }
  0x25   : > { %v389_v6 = vld [vmem:[%s342_s13 + $0x20] sm:$0xff]  ;;  %386 = vst [vmem:[%s338_s21] sm:$0xff] %v385_v4  ;;  %388 = vst [vmem:[%s338_s21 + $0x8] sm:$0xff] %v387_v5  ;;  %v391_v7 = vld [vmem:[%s342_s13 + $0x30] sm:$0xff] }
  0x26   : > { %390 = vst [vmem:[%s338_s21 + $0x10] sm:$0xff] %v389_v6  ;;  %v393_v8 = vld [vmem:[%s342_s13 + $0x40] sm:$0xff]  ;;  %v395_v9 = vld [vmem:[%s342_s13 + $0x50] sm:$0xff]  ;;  %392 = vst [vmem:[%s338_s21 + $0x18] sm:$0xff] %v391_v7 }
  0x27   : > { %394 = vst [vmem:[%s338_s21 + $0x20] sm:$0xff] %v393_v8  ;;  %396 = vst [vmem:[%s338_s21 + $0x28] sm:$0xff] %v395_v9  ;;  %v397_v10 = vld [vmem:[%s342_s13 + $0x60] sm:$0xff]  ;;  %v399_v11 = vld [vmem:[%s342_s13 + $0x70] sm:$0xff] }
  0x28   : > { %398 = vst [vmem:[%s338_s21 + $0x30] sm:$0xff] %v397_v10  ;;  %400 = vst [vmem:[%s338_s21 + $0x38] sm:$0xff] %v399_v11 }
  0x29 PF: > { %p1208_p12 = scmp.ge.s32.totalorder %s1514_s12, 1  ;;  %p405_p13 = scmp.lt.s32.totalorder %s1514_s12, 5 }
  0x2b   : > { %p406_p0 = pnand %p1208_p12, %p405_p13 }
  0x2c   : > { %s1660_s18 = sand.u32 (!%p406_p0), 1, %s1490_s28   ;;  %s1237_s23 = sshll.u32 (!%p406_p0), %s1502_s9, 4 }
  0x2d   : > { %409 = sbr.rel (%p406_p0) target bundleno = 501 (0x1f5), region = 120  ;;  %s1209_s15 = sshll.u32 (!%p406_p0), %s1660_s18, 5 }
  0x2e   : > { %s414_s17 = scalar_lea.vmem (!%p406_p0), [#allocation2], %s1209_s15  ;;  %s1210_s13 = sshll.u32 (!%p406_p0), %s1660_s18, 6 }
  0x2f   : > { %s1836_s21 = scalar_lea.vmem (!%p406_p0), [#allocation3], %s1210_s13  ;;  %s1844_s22 = scalar_lea.vmem (!%p406_p0), [#allocation4], %s1210_s13 }
  0x30   : > { %s1092_s25 = sadd.s32 (!%p406_p0), %s1498_s30, %s1237_s23  ;;  %s1095_s9 = sshll.u32 (!%p406_p0), %s1844_s22, 4  ;;  %s1859_s9 = int_to_ptr.vmem [resolvable:$true] %s1095_s9 }
  0x31   : > { %s1238_s30 = sshll.u32 (!%p406_p0), %s1092_s25, 7  ;;  %s1081_s14 = scalar_lea.sflag (!%p406_p0), [#allocation5], %s1660_s18 }
  0x32   : > { %v468_v12 = vld [vmem:[%s1922_s2] sm:$0xff]  ;;  %vm524_vm0 = vcmask 261120   ;;  %v1516_v14 = vmov 0   ;;  %v479_v15 = vld [vmem:[%s1923_s3 + $0x18] sm:$0xff]  ;;  %v458_v17 = vld [vmem:[%s414_s17 + $0x10] sm:$0xff]  ;;  %s1865_s26 = scalar_lea.hbm %s1928_s8, %s1238_s30  ;;  %s1517_s13 = smov [#allocation4]  }
  0x33   : > { %v472_v13 = vld [vmem:[%s1922_s2 + $0x20] sm:$0xff]  ;;  %1285 = vmatprep.mubr.msk.f32.mxu0 %vm524_vm0, %v468_v12  ;;  %1420 = vset.pattern.permute.xlu0 %v1516_v14  ;;  %v459_v16 = vld [vmem:[%s414_s17 + $0x18] sm:$0xff]  ;;  %v457_v18 = vld [vmem:[%s414_s17 + $0x8] sm:$0xff] }
  0x34   : > { %1291 = vmatprep.mubr.msk.f32.mxu1 %vm524_vm0, %v472_v13  ;;  %1421 = vset.pattern.permute.xlu1 %v1516_v14  ;;  %v456_v19 = vld [vmem:[%s414_s17] sm:$0xff]  ;;  %v469_v20 = vld [vmem:[%s1922_s2 + $0x8] sm:$0xff]  ;;  %v470_v22 = vld [vmem:[%s1922_s2 + $0x10] sm:$0xff]  ;;  %s1422_s17 = scalar_lea.vmem %s1859_s9, 1024 }
  0x35   : > { %501 = vperm.xlu0 %1420, %v479_v15   ;;  %1277 = vmatprep.subr.mxu0 %v459_v16  ;;  %v473_v21 = vld [vmem:[%s1922_s2 + $0x28] sm:$0xff]  ;;  %v474_v23 = vld [vmem:[%s1922_s2 + $0x30] sm:$0xff]  ;;  %v471_v26 = vld [vmem:[%s1922_s2 + $0x18] sm:$0xff]  ;;  %p1423_p1 = scmp.ne.s32.totalorder %s1859_s9, %s1422_s17 }
  0x36   : > { %1337 = vmatprep.subr.mxu1 %v459_v16  ;;  %1278 = vmatpush3.msra.mxu0 %v459_v16  ;;  %v477_v24 = vld [vmem:[%s1923_s3 + $0x8] sm:$0xff]  ;;  %v478_v25 = vld [vmem:[%s1923_s3 + $0x10] sm:$0xff]  ;;  %v475_v27 = vld [vmem:[%s1922_s2 + $0x38] sm:$0xff] }
  0x37   : > { %1341 = vmatpush3.msra.mxu1 %v459_v16  ;;  %1279 = vmatprep.subr.mxu0 %v458_v17  ;;  %v483_v28 = vld [vmem:[%s1923_s3 + $0x38] sm:$0xff]  ;;  %v476_v29 = vld [vmem:[%s1923_s3] sm:$0xff]  ;;  %v482_v30 = vld [vmem:[%s1923_s3 + $0x30] sm:$0xff]  ;;  %p1424_p2 = pnand %p1423_p1, %p1626_p8 }
  0x38   : > { %1338 = vmatprep.subr.mxu1 %v458_v17  ;;  %1280 = vmatpush3.msra.mxu0 %v458_v17  ;;  %v481_v31 = vld [vmem:[%s1923_s3 + $0x28] sm:$0xff]  ;;  %v480_v32 = vld [vmem:[%s1923_s3 + $0x20] sm:$0xff]  ;;  %v688_v35 = vld [vmem:[%s1925_s5 + $0x10] sm:$0xff] }
  0x39   : > { %1342 = vmatpush3.msra.mxu1 %v458_v17  ;;  %1281 = vmatprep.subr.mxu0 %v457_v18  ;;  %v686_v33 = vld [vmem:[%s1925_s5] sm:$0xff]  ;;  %v687_v34 = vld [vmem:[%s1925_s5 + $0x8] sm:$0xff]  ;;  %v689_v36 = vld [vmem:[%s1925_s5 + $0x18] sm:$0xff]  ;;  %p1425_p3 = pneg %p1424_p2 }
  0x3a   : > { %1339 = vmatprep.subr.mxu1 %v457_v18  ;;  %1282 = vmatpush3.msra.mxu0 %v457_v18  ;;  %v690_v37 = vld [vmem:[%s1925_s5 + $0x20] sm:$0xff]  ;;  %v691_v38 = vld [vmem:[%s1925_s5 + $0x28] sm:$0xff]  ;;  %v692_v39 = vld [vmem:[%s1925_s5 + $0x30] sm:$0xff] }
  0x3b   : > { %1343 = vmatpush3.msra.mxu1 %v457_v18  ;;  %1283 = vmatprep.subr.mxu0 %v456_v19  ;;  %v693_v40 = vld [vmem:[%s1925_s5 + $0x38] sm:$0xff]  ;;  %v871_v41 = vld [vmem:[%s1927_s7] sm:$0xff]  ;;  %v872_v42 = vld [vmem:[%s1927_s7 + $0x8] sm:$0xff] }
  0x3c   : > { %1340 = vmatprep.subr.mxu1 %v456_v19  ;;  %1284 = vmatpush3.msra.mxu0 %v456_v19  ;;  %v873_v43 = vld [vmem:[%s1927_s7 + $0x10] sm:$0xff]  ;;  %v874_v44 = vld [vmem:[%s1927_s7 + $0x18] sm:$0xff]  ;;  %v875_v45 = vld [vmem:[%s1927_s7 + $0x20] sm:$0xff] }
  0x3d   : > { %1344 = vmatpush3.msra.mxu1 %v456_v19  ;;  %1286 = vmatmul.mubr.msk.f32.vlgmr.msra.gmra.mxu0 %vm524_vm0, %v469_v20  ;;  %v876_v46 = vld [vmem:[%s1927_s7 + $0x28] sm:$0xff]  ;;  %v877_v47 = vld [vmem:[%s1927_s7 + $0x30] sm:$0xff]  ;;  %v878_v48 = vld [vmem:[%s1927_s7 + $0x38] sm:$0xff] }
  0x3e   : > { %1292 = vmatmul.mubr.msk.f32.vlgmr.msra.gmra.mxu1 %vm524_vm0, %v473_v21  ;;  %1288 = vmatprep.mubr.msk.f32.mxu0 %vm524_vm0, %v470_v22  ;;  %v678_v49 = vld [vmem:[%s1924_s4] sm:$0xff] }
  0x3f   : > { %1294 = vmatprep.mubr.msk.f32.mxu1 %vm524_vm0, %v474_v23  ;;  %491 = vperm.xlu1 %1421, %v477_v24   ;;  %v863_v50 = vld [vmem:[%s1926_s6] sm:$0xff] }
  0x40   : > { %496 = vperm.xlu0 %1420, %v478_v25  }
  0x41   : > { %1289 = vmatmul.mubr.msk.f32.gmra.mxu0 %vm524_vm0, %v471_v26 }
  0x42   : > { %1295 = vmatmul.mubr.msk.f32.gmra.mxu1 %vm524_vm0, %v475_v27  ;;  %1325 = vmatprep.mubr.msk.f32.mxu0 %vm524_vm0, %v863_v50  ;;  %v679_v27 = vld [vmem:[%s1924_s4 + $0x8] sm:$0xff] }
  0x43   : > { %521 = vperm.xlu1 %1421, %v483_v28   ;;  %1305 = vmatprep.mubr.msk.f32.mxu1 %vm524_vm0, %v678_v49  ;;  %v864_v28 = vld [vmem:[%s1926_s6 + $0x8] sm:$0xff] }
  0x44   : > { %486 = vperm.xlu0 %1420, %v476_v29   ;;  %v680_v29 = vld [vmem:[%s1924_s4 + $0x10] sm:$0xff] }
  0x47   : > { %516 = vperm.xlu1 %1421, %v482_v30   ;;  %v865_v30 = vld [vmem:[%s1926_s6 + $0x10] sm:$0xff] }
  0x48   : > { %511 = vperm.xlu0 %1420, %v481_v31   ;;  %v681_v31 = vld [vmem:[%s1924_s4 + $0x18] sm:$0xff] }
  0x4b   : > { %506 = vperm.xlu1 %1421, %v480_v32   ;;  %v866_v32 = vld [vmem:[%s1926_s6 + $0x18] sm:$0xff] }
  0x4c   : > { %696 = vperm.xlu0 %1420, %v686_v33   ;;  %v682_v33 = vld [vmem:[%s1924_s4 + $0x20] sm:$0xff] }
  0x4f   : > { %701 = vperm.xlu1 %1421, %v687_v34   ;;  %v867_v34 = vld [vmem:[%s1926_s6 + $0x20] sm:$0xff] }
  0x50   : > { %706 = vperm.xlu0 %1420, %v688_v35   ;;  %v683_v35 = vld [vmem:[%s1924_s4 + $0x28] sm:$0xff] }
  0x53   : > { %711 = vperm.xlu1 %1421, %v689_v36   ;;  %v868_v36 = vld [vmem:[%s1926_s6 + $0x28] sm:$0xff] }
  0x54   : > { %716 = vperm.xlu0 %1420, %v690_v37   ;;  %v684_v37 = vld [vmem:[%s1924_s4 + $0x30] sm:$0xff] }
  0x57   : > { %721 = vperm.xlu1 %1421, %v691_v38   ;;  %v869_v38 = vld [vmem:[%s1926_s6 + $0x30] sm:$0xff] }
  0x58   : > { %726 = vperm.xlu0 %1420, %v692_v39   ;;  %v685_v39 = vld [vmem:[%s1924_s4 + $0x38] sm:$0xff] }
  0x5b   : > { %731 = vperm.xlu1 %1421, %v693_v40   ;;  %v870_v40 = vld [vmem:[%s1926_s6 + $0x38] sm:$0xff] }
  0x5c   : > { %881 = vperm.xlu0 %1420, %v871_v41  }
  0x5f   : > { %886 = vperm.xlu1 %1421, %v872_v42  }
  0x60   : > { %891 = vperm.xlu0 %1420, %v873_v43  }
  0x63   : > { %896 = vperm.xlu1 %1421, %v874_v44  }
  0x64   : > { %901 = vperm.xlu0 %1420, %v875_v45  }
  0x67   : > { %906 = vperm.xlu1 %1421, %v876_v46  }
  0x68   : > { %911 = vperm.xlu0 %1420, %v877_v47  }
  0x6b   : > { %916 = vperm.xlu1 %1421, %v878_v48  }
  0xb0   : > { %v502_v51 = vpop.permute.xlu0 %501 }
  0xba   : > { %v492_v52 = vpop.permute.xlu1 %491 }
  0xbb   : > { %v497_v53 = vpop.permute.xlu0 %496 }
  0xbe   : > { %v522_v54 = vpop.permute.xlu1 %521 }
  0xbf   : > { %v487_v55 = vpop.permute.xlu0 %486 }
  0xc2   : > { %v517_v56 = vpop.permute.xlu1 %516 }
  0xc3   : > { %v512_v61 = vpop.permute.xlu0 %511 }
  0xc6   : > { %v507_v2 = vpop.permute.xlu1 %506 }
  0xc7   : > { %v697_v42 = vpop.permute.xlu0 %696 }
  0xca   : > { %v702_v41 = vpop.permute.xlu1 %701 }
  0xcb   : > { %v707_v44 = vpop.permute.xlu0 %706 }
  0xce   : > { %v712_v43 = vpop.permute.xlu1 %711 }
  0xcf   : > { %v717_v46 = vpop.permute.xlu0 %716 }
  0xd2   : > { %v722_v45 = vpop.permute.xlu1 %721 }
  0xd3   : > { %v1831_v48 = vpop.permute.xlu0 %726 }
  0xd6   : > { %v732_v47 = vpop.permute.xlu1 %731 }
  0xd7   : > { %v882_v50 = vpop.permute.xlu0 %881 }
  0xda   : > { %v887_v49 = vpop.permute.xlu1 %886 }
  0xfd   : > { %v1287_v57 = vpop.f32.mrf.mxu0 }
  0xfe   : > { %v1293_v58 = vpop.f32.mrf.mxu1  ;;  %v621_v62 = vadd.f32 %v1287_v57, %v492_v52  ;;  %v897_v57 = vpop.permute.xlu1 %896 }
  0xff   : > { %v615_v59 = vpop.f32.mrf.mxu0  ;;  %v641_v63 = vadd.f32 %v1293_v58, %v512_v61 }
 0x100   : > { %v635_v60 = vpop.f32.mrf.mxu1  ;;  %v616_v5 = vadd.f32 %v615_v59, %v487_v55  ;;  %v663_v13 = vmul.f32 0.1, %v621_v62  ;;  %vm655_vm5 = vcmp.ge.f32.partialorder %v621_v62, 0.0 }
 0x101   : > { %v1290_v0 = vpop.f32.mrf.mxu0  ;;  %v636_v6 = vadd.f32 %v635_v60, %v507_v2  ;;  %v667_v14 = vmul.f32 0.1, %v641_v63  ;;  %vm659_vm6 = vcmp.ge.f32.partialorder %v641_v63, 0.0  ;;  %v460_v60 = vld [vmem:[%s1836_s21] sm:$0xff] }
 0x102   : > { %v1296_v1 = vpop.f32.mrf.mxu1  ;;  %v631_v3 = vadd.f32 %v1290_v0, %v502_v51  ;;  %v662_v19 = vmul.f32 0.1, %v616_v5  ;;  %vm654_vm7 = vcmp.ge.f32.partialorder %v616_v5, 0.0  ;;  %v671_v23 = vsel %vm655_vm5, %v621_v62, %v663_v13  ;;  %v462_v13 = vld [vmem:[%s1836_s21 + $0x10] sm:$0xff] }
 0x103   : > { %v651_v4 = vadd.f32 %v1296_v1, %v522_v54  ;;  %v625_v7 = vpop.f32.mrf.mxu0  ;;  %v666_v20 = vmul.f32 0.1, %v636_v6  ;;  %vm658_vm8 = vcmp.ge.f32.partialorder %v636_v6, 0.0  ;;  %v675_v24 = vsel %vm659_vm6, %v641_v63, %v667_v14  ;;  %v461_v54 = vld [vmem:[%s1836_s21 + $0x8] sm:$0xff]  ;;  %v892_v63 = vpop.permute.xlu0 %891 }
 0x104   : > { %v645_v8 = vpop.f32.mrf.mxu1  ;;  %v665_v9 = vmul.f32 0.1, %v631_v3  ;;  %v626_v11 = vadd.f32 %v625_v7, %v497_v53  ;;  %vm657_vm1 = vcmp.ge.f32.partialorder %v631_v3, 0.0  ;;  %v670_v25 = vsel %vm654_vm7, %v616_v5, %v662_v19  ;;  %v463_v5 = vld [vmem:[%s1836_s21 + $0x18] sm:$0xff] }
 0x105   : > { %v669_v10 = vmul.f32 0.1, %v651_v4  ;;  %v646_v12 = vadd.f32 %v645_v8, %v517_v56  ;;  %vm661_vm2 = vcmp.ge.f32.partialorder %v651_v4, 0.0  ;;  %v674_v26 = vsel %vm658_vm8, %v636_v6, %v666_v20 }
 0x106   : > { %v664_v15 = vmul.f32 0.1, %v626_v11  ;;  %v673_v17 = vsel %vm657_vm1, %v631_v3, %v665_v9  ;;  %vm656_vm3 = vcmp.ge.f32.partialorder %v626_v11, 0.0 }
 0x107   : > { %v668_v16 = vmul.f32 0.1, %v646_v12  ;;  %v677_v18 = vsel %vm661_vm2, %v651_v4, %v669_v10  ;;  %1297 = vmatprep.subr.mxu1 %v673_v17  ;;  %vm660_vm4 = vcmp.ge.f32.partialorder %v646_v12, 0.0 }
 0x108   : > { %1317 = vmatprep.subr.mxu0 %v677_v18  ;;  %1298 = vmatpush3.msra.mxu1 %v673_v17  ;;  %v672_v21 = vsel %vm656_vm3, %v626_v11, %v664_v15 }
 0x109   : > { %1318 = vmatpush3.msra.mxu0 %v677_v18  ;;  %v676_v22 = vsel %vm660_vm4, %v646_v12, %v668_v16  ;;  %1299 = vmatprep.subr.mxu1 %v672_v21  ;;  %v907_v16 = vpop.permute.xlu1 %906 }
 0x10a   : > { %1319 = vmatprep.subr.mxu0 %v676_v22  ;;  %1300 = vmatpush3.msra.mxu1 %v672_v21 }
 0x10b   : > { %1320 = vmatpush3.msra.mxu0 %v676_v22  ;;  %1301 = vmatprep.subr.mxu1 %v671_v23  ;;  %v465_v22 = vld [vmem:[%s1836_s21 + $0x28] sm:$0xff] }
 0x10c   : > { %1321 = vmatprep.subr.mxu0 %v675_v24  ;;  %1302 = vmatpush3.msra.mxu1 %v671_v23 }
 0x10d   : > { %1322 = vmatpush3.msra.mxu0 %v675_v24  ;;  %1303 = vmatprep.subr.mxu1 %v670_v25 }
 0x10e   : > { %1323 = vmatprep.subr.mxu0 %v674_v26  ;;  %1304 = vmatpush3.msra.mxu1 %v670_v25  ;;  %v902_v25 = vpop.permute.xlu0 %901 }
 0x10f   : > { %1324 = vmatpush3.msra.mxu0 %v674_v26  ;;  %1306 = vmatmul.mubr.msk.f32.vlgmr.msra.gmra.mxu1 %vm524_vm0, %v679_v27 }
 0x110   : > { %1326 = vmatmul.mubr.msk.f32.vlgmr.msra.gmra.mxu0 %vm524_vm0, %v864_v28  ;;  %1308 = vmatprep.mubr.msk.f32.mxu1 %vm524_vm0, %v680_v29 }
 0x111   : > { %1328 = vmatprep.mubr.msk.f32.mxu0 %vm524_vm0, %v865_v30 }
 0x113   : > { %1309 = vmatmul.mubr.msk.f32.gmra.mxu1 %vm524_vm0, %v681_v31  ;;  %v464_v31 = vld [vmem:[%s1836_s21 + $0x20] sm:$0xff] }
 0x114   : > { %1329 = vmatmul.mubr.msk.f32.gmra.mxu0 %vm524_vm0, %v866_v32  ;;  %1311 = vmatprep.mubr.msk.f32.mxu1 %vm524_vm0, %v682_v33 }
 0x115   : > { %1331 = vmatprep.mubr.msk.f32.mxu0 %vm524_vm0, %v867_v34 }
 0x117   : > { %1312 = vmatmul.mubr.msk.f32.gmra.mxu1 %vm524_vm0, %v683_v35 }
 0x118   : > { %1332 = vmatmul.mubr.msk.f32.gmra.mxu0 %vm524_vm0, %v868_v36  ;;  %1314 = vmatprep.mubr.msk.f32.mxu1 %vm524_vm0, %v684_v37 }
 0x119   : > { %1334 = vmatprep.mubr.msk.f32.mxu0 %vm524_vm0, %v869_v38 }
 0x11b   : > { %1315 = vmatmul.mubr.msk.f32.gmra.mxu1 %vm524_vm0, %v685_v39  ;;  %v467_v39 = vld [vmem:[%s1836_s21 + $0x38] sm:$0xff] }
 0x11c   : > { %1335 = vmatmul.mubr.msk.f32.gmra.mxu0 %vm524_vm0, %v870_v40 }
 0x1cf   : > { %v1307_v51 = vpop.f32.mrf.mxu1 }
 0x1d0   : > { %v1327_v52 = vpop.f32.mrf.mxu0  ;;  %v830_v53 = vadd.f32 %v1307_v51, %v702_v41 }
 0x1d1   : > { %v824_v55 = vpop.f32.mrf.mxu1  ;;  %v1015_v1 = vadd.f32 %v1327_v52, %v887_v49 }
 0x1d2   : > { %v1009_v56 = vpop.f32.mrf.mxu0  ;;  %v1049_v58 = vadd.f32 1.0, %v830_v53  ;;  %v825_v59 = vadd.f32 %v824_v55, %v697_v42  ;;  %v912_v53 = vpop.permute.xlu0 %911 }
 0x1d3   : > { %v1310_v61 = vpop.f32.mrf.mxu1  ;;  %v1010_v4 = vadd.f32 %v1009_v56, %v882_v50 }
 0x1d4   : > { %v1330_v62 = vpop.f32.mrf.mxu0  ;;  %v1057_v0 = vmul.f32 %v1049_v58, %v461_v54  ;;  %v1048_v2 = vadd.f32 1.0, %v825_v59  ;;  %v840_v3 = vadd.f32 %v1310_v61, %v712_v43 }
 0x1d5   : > { %v834_v6 = vpop.f32.mrf.mxu1  ;;  %v1025_v12 = vadd.f32 %v1330_v62, %v897_v57 }
 0x1d6   : > { %v1019_v7 = vpop.f32.mrf.mxu0  ;;  %v1065_v8 = vadd.f32 %v1057_v0, %v1015_v1  ;;  %v1056_v9 = vmul.f32 %v1048_v2, %v460_v60  ;;  %v1051_v10 = vadd.f32 1.0, %v840_v3  ;;  %v835_v11 = vadd.f32 %v834_v6, %v707_v44 }
 0x1d7   : > { %v1313_v14 = vpop.f32.mrf.mxu1  ;;  %v1020_v21 = vadd.f32 %v1019_v7, %v892_v63 }
 0x1d8   : > { %v1333_v15 = vpop.f32.mrf.mxu0  ;;  %1073 = vst [vmem:[%s1844_s22 + $0x8] sm:$0xff] %v1065_v8  ;;  %v1064_v17 = vadd.f32 %v1056_v9, %v1010_v4  ;;  %v1059_v18 = vmul.f32 %v1051_v10, %v463_v5  ;;  %v1050_v19 = vadd.f32 1.0, %v835_v11  ;;  %v850_v20 = vadd.f32 %v1313_v14, %v722_v45  ;;  %v917_v45 = vpop.permute.xlu1 %916 }
 0x1d9   : > { %v844_v23 = vpop.f32.mrf.mxu1  ;;  %v1035_v30 = vadd.f32 %v1333_v15, %v907_v16 }
 0x1da   : > { %v1029_v24 = vpop.f32.mrf.mxu0  ;;  %1072 = vst [vmem:[%s1844_s22] sm:$0xff] %v1064_v17  ;;  %v1067_v26 = vadd.f32 %v1059_v18, %v1025_v12  ;;  %v1058_v27 = vmul.f32 %v1050_v19, %v462_v13  ;;  %v1053_v28 = vadd.f32 1.0, %v850_v20  ;;  %v845_v29 = vadd.f32 %v844_v23, %v717_v46  ;;  %v466_v46 = vld [vmem:[%s1836_s21 + $0x30] sm:$0xff]  ;;  %s1426_s21 = sshll.u32 %s1517_s13, 4  ;;  %s1427_s21 = int_to_ptr.vmem [resolvable:$false] %s1426_s21 }
 0x1db   : > { %v1316_v32 = vpop.f32.mrf.mxu1  ;;  %v1030_v38 = vadd.f32 %v1029_v24, %v902_v25  ;;  %s1428_s23 = scalar_lea.vmem %s1427_s21, 2048  ;;  %p1429_p4 = scmp.lt.s32.totalorder %s1859_s9, %s1427_s21 }
 0x1dc   : > { %v1336_v33 = vpop.f32.mrf.mxu0  ;;  %1075 = vst [vmem:[%s1844_s22 + $0x18] sm:$0xff] %v1067_v26  ;;  %v1066_v34 = vadd.f32 %v1058_v27, %v1020_v21  ;;  %v1061_v35 = vmul.f32 %v1053_v28, %v465_v22  ;;  %v1052_v36 = vadd.f32 1.0, %v845_v29  ;;  %v860_v37 = vadd.f32 %v1316_v32, %v732_v47  ;;  %p1430_p5 = scmp.lt.s32.totalorder %s1428_s23, %s1422_s17 }
 0x1dd   : > { %v854_v40 = vpop.f32.mrf.mxu1  ;;  %v1045_v51 = vadd.f32 %v1336_v33, %v917_v45 }
 0x1de   : > { %1074 = vst [vmem:[%s1844_s22 + $0x10] sm:$0xff] %v1066_v34  ;;  %v1069_v41 = vadd.f32 %v1061_v35, %v1035_v30  ;;  %v1060_v42 = vmul.f32 %v1052_v36, %v464_v31  ;;  %v1055_v43 = vadd.f32 1.0, %v860_v37  ;;  %v855_v44 = vadd.f32 %v854_v40, %v1831_v48  ;;  %v1039_v49 = vpop.f32.mrf.mxu0  ;;  %p1431_p6 = por %p1430_p5, %p1429_p4 }
 0x1df   : > { %v1040_v55 = vadd.f32 %v1039_v49, %v912_v53 }
 0x1e0   : > { %1077 = vst [vmem:[%s1844_s22 + $0x28] sm:$0xff] %v1069_v41  ;;  %v1068_v47 = vadd.f32 %v1060_v42, %v1030_v38  ;;  %v1063_v50 = vmul.f32 %v1055_v43, %v467_v39  ;;  %v1054_v52 = vadd.f32 1.0, %v855_v44  ;;  %p1432_p7 = pnand %p1431_p6, %p1425_p3 }
 0x1e2   : > { %1076 = vst [vmem:[%s1844_s22 + $0x20] sm:$0xff] %v1068_v47  ;;  %v1071_v48 = vadd.f32 %v1063_v50, %v1045_v51  ;;  %v1062_v54 = vmul.f32 %v1054_v52, %v466_v46 }
 0x1e4   : > { %1079 = vst [vmem:[%s1844_s22 + $0x38] sm:$0xff] %v1071_v48  ;;  %v1070_v56 = vadd.f32 %v1062_v54, %v1040_v55 }
 0x1e6   : > { %1078 = vst [vmem:[%s1844_s22 + $0x30] sm:$0xff] %v1070_v56 }
 0x1e7   : > { %1435 = shalt.err (!%p1432_p7)
}
 0x1e8   : > { %s1436_s22 = scalar_lea.hbm %s1865_s26, 1024  ;;  %s1440_s16 = scalar_lea.hbm %s1928_s8, 4096 }
 0x1e9   : > { %p1437_p10 = scmp.ne.s32.totalorder %s1865_s26, %s1436_s22  ;;  %p1441_p13 = scmp.lt.s32.totalorder %s1865_s26, %s1928_s8 }
 0x1ea   : > { %p1442_p0 = scmp.lt.s32.totalorder %s1440_s16, %s1436_s22 }
 0x1eb   : > { %p1438_p11 = pnand %p1437_p10, %p1626_p8 }
 0x1ec   : > { %p1443_p1 = por %p1442_p0, %p1441_p13 }
 0x1ed   : > { %p1439_p12 = pneg %p1438_p11 }
 0x1ef   : > { %p1444_p2 = pnand %p1443_p1, %p1439_p12 }
 0x1f1   : > { %1447 = shalt.err (!%p1444_p2)
}
 0x1f2   : > { %s1518_s17 = smov 128   ;;  %s1519_s21 = smov 256  }
 0x1f3   : > { %s1520_s23 = smov 8  }
 0x1f4   : > { %1345 = dma.vmem_to_hbm [thread:$0]  (%p1626_p8), %s1859_s9, 1024, %s1865_s26, %s1081_s14, %s1518_s17, %s1519_s21, %s1520_s23  }
 0x1f5 PF: > { %p1351_p3 = scmp.ge.s32.totalorder %s1514_s12, 2  ;;  %s1110_s25 = sand.u32 1, %s1486_s27  }
 0x1f6   : > { %s1111_s22 = scalar_lea.sflag [#allocation5], %s1110_s25 }
 0x1f7   : > { %p1348_p4 = pnand %p1351_p3, %p1630_p9 }
 0x1f9   : > { %p1349_p5 = pneg %p1348_p4 }
 0x1fb   : > { %1481 = dma.done.wait (%p1349_p5), %s1111_s22, 1024  }
 0x1fc   : > { %1483 = vsyncadd (%p1349_p5), %s1111_s22, 4294966272  ;;  %s21_s12 = sadd.s32 1, %s1514_s12   ;;  %s1936_s19 = sld [smem:[#allocation7_spill]] }
 0x1fd   : > { %p18_p6 = scmp.ge.s32.totalorder %s21_s12, 6   ;;  %s1937_s18 = sld [smem:[#allocation8_spill]] }
 0x1fe   : > { %s1938_s27 = smov %s1490_s28  ;;  %s1939_s28 = smov %s1494_s29 }
 0x1ff   : > { %s1940_s29 = smov %s1638_s24  ;;  %s1941_s30 = smov %s1506_s10 }
 0x200   : > { %s1942_s9 = smov %s1510_s11  ;;  %20 = sbr.rel (!%p18_p6) target bundleno = 5 (0x5), region = 176 }
 0x202   : > { %s1943_s10 = smov %s1936_s19 }
 0x203   : > { %s1944_s11 = smov %s1937_s18 }
 0x205   :  { %1116 = vsyncpa [#allocation5], 1 }
 0x206   :  { %1118 = vsyncpa [#allocation5 + $0x1], 1 }

</bundles_post_ra>
